<compile_context>
chip_gen: v7x
topology: tpu7x:2x2x1
jax: 0.10.0
libtpu: 0.0.40
codegen_flags: <defaults>
</compile_context>

<pallas_src>
import functools

import jax
import jax.numpy as jnp
from jax import lax
from jax.experimental import pallas as pl
from jax.experimental.pallas import tpu as pltpu

BN_EPS = 1e-5


def _ge_kernel(x_ref, p_ref, y_ref, acc_ref, *, c):
    """One batch element per grid step.

    x_ref / y_ref: (1, 4, ho, wo*C) phase-major packed input / output,
                   phase index = 2*row_parity + col_parity.
    p_ref:         (10, wo*C): rows 0..8 = BN-fused depthwise weights (row t = 3a+b,
                   tiled with period C along the fused lane axis), row 9 = fused bias.
    acc_ref:       VMEM (ho, wo*C) f32 scratch holding the pre-sigmoid gather output.
    """
    ho, woc = acc_ref.shape

    # Phase tiles of x (loaded once, reused for the conv taps and for the gating).
    p00 = x_ref[0, 0, :, :].astype(jnp.float32)   # x[2i,   2j  ]
    p01 = x_ref[0, 1, :, :].astype(jnp.float32)   # x[2i,   2j+1]
    p10 = x_ref[0, 2, :, :].astype(jnp.float32)   # x[2i+1, 2j  ]
    p11 = x_ref[0, 3, :, :].astype(jnp.float32)   # x[2i+1, 2j+1]

    # BN-fused depthwise weight rows (each (1, woc); broadcasts over sublanes).
    def w(t):
        return p_ref[t:t + 1, :]

    bias = p_ref[9:10, :]

    # ---- depthwise 3x3 / stride 2 / pad 1 conv with BN folded in --------------
    # Interior taps (a, b in {1, 2}) read the phases un-shifted; initialize the
    # accumulator with them plus the fused BN bias (no zeros init / extra pass).
    acc_ref[...] = (p00 * w(4) + p01 * w(5) + p10 * w(7) + p11 * w(8) + bias)
    # Taps with a == 0 read phase row i-1 (zero-padded border at i == 0).
    acc_ref[1:, :] += (p10[:ho - 1, :] * w(1)
                       + p11[:ho - 1, :] * w(2))
    # Taps with b == 0 read phase column j-1, i.e. fused-lane offset -C
    # (the tiled weight rows are C-periodic, so slicing them stays aligned).
    acc_ref[:, c:] += (p01[:, :woc - c] * w(3)[:, :woc - c]
                       + p11[:, :woc - c] * w(6)[:, :woc - c])
    # Tap (0, 0): shifted in both row and column.
    acc_ref[1:, c:] += p11[:ho - 1, :woc - c] * w(0)[:, :woc - c]

    # ---- sigmoid (numerically stable; reciprocal on the EUP slot) -------------
    a = acc_ref[...]
    z = jnp.exp(-jnp.abs(a))
    att = jnp.where(a >= 0, 1.0, z) * pl.reciprocal(1.0 + z, approx=True)

    # ---- gate: nearest 2x upsample == the same att tile gates all four phases -
    y_ref[0, 0, :, :] = (att * p00).astype(y_ref.dtype)
    y_ref[0, 1, :, :] = (att * p01).astype(y_ref.dtype)
    y_ref[0, 2, :, :] = (att * p10).astype(y_ref.dtype)
    y_ref[0, 3, :, :] = (att * p11).astype(y_ref.dtype)


@jax.jit
def ge_params_forward(x_nchw, conv_w, gamma, beta, run_mean, run_var):
    n, c, h, w = x_nchw.shape
    assert h % 2 == 0 and w % 2 == 0 and h >= 4 and w >= 4
    ho, wo = h // 2, w // 2
    woc = wo * c
    dt = x_nchw.dtype

    # ---- glue: one packing transpose NCHW -> phase-major (N, 4, ho, wo*C) ----
    #   xp[n, 2*pr + pc, i, j*C + c] = x[n, c, 2i + pr, 2j + pc]
    xp = x_nchw.reshape(n, c, ho, 2, wo, 2)
    xp = jnp.transpose(xp, (0, 3, 5, 2, 4, 1)).reshape(n, 4, ho, woc)

    # ---- fold BatchNorm (inference / running stats) into conv weight + bias ----
    scale = gamma.astype(jnp.float32) * lax.rsqrt(run_var.astype(jnp.float32) + BN_EPS)
    w_flat = jnp.transpose(conv_w[:, 0], (1, 2, 0)).reshape(9, c).astype(jnp.float32)
    wf = w_flat * scale[None, :]                                        # (9, C)
    bias = beta.astype(jnp.float32) - run_mean.astype(jnp.float32) * scale
    params = jnp.concatenate([wf, bias[None, :]], axis=0)               # (10, C)
    params = jnp.tile(params, (1, wo))                                  # (10, wo*C)

    yp = pl.pallas_call(
        functools.partial(_ge_kernel, c=c),
        out_shape=jax.ShapeDtypeStruct((n, 4, ho, woc), dt),
        grid=(n,),
        in_specs=[pl.BlockSpec((1, 4, ho, woc), lambda i: (i, 0, 0, 0)),
                  pl.BlockSpec((10, woc), lambda i: (0, 0))],
        out_specs=pl.BlockSpec((1, 4, ho, woc), lambda i: (i, 0, 0, 0)),
        scratch_shapes=[pltpu.VMEM((ho, woc), jnp.float32)],
        # Write the gated result in place over the packed input (same shape,
        # same dtype, same block index per grid step): one fewer HBM buffer.
        input_output_aliases={0: 0},
        compiler_params=pltpu.CompilerParams(dimension_semantics=("parallel",)),
    )(xp, params)

    # ---- glue: one unpacking transpose phase-major -> NCHW ----
    out = yp.reshape(n, 2, 2, ho, wo, c)
    out = jnp.transpose(out, (0, 5, 3, 1, 4, 2)).reshape(n, c, h, w)
    return out


def ge_params_reference(x_nchw, conv_w, gamma, beta, run_mean, run_var):
    """Plain-JAX reference of the PyTorch forward (eval-mode BN)."""
    c = x_nchw.shape[1]
    conv = lax.conv_general_dilated(
        x_nchw, conv_w, window_strides=(2, 2), padding=((1, 1), (1, 1)),
        feature_group_count=c, dimension_numbers=("NCHW", "OIHW", "NCHW"))
    g = gamma[None, :, None, None]
    b = beta[None, :, None, None]
    m = run_mean[None, :, None, None]
    v = run_var[None, :, None, None]
    bn = (conv - m) * lax.rsqrt(v + BN_EPS) * g + b
    att = jnp.repeat(jnp.repeat(bn, 2, axis=2), 2, axis=3)   # nearest 2x upsample
    att = jax.nn.sigmoid(att)
    return att * x_nchw


if __name__ == "__main__":
    key = jax.random.PRNGKey(0)
    k_x, k_w, k_g, k_b, k_m, k_v = jax.random.split(key, 6)

    N, C, H, W = 2, 4, 16, 16
    x = jax.random.normal(k_x, (N, C, H, W), jnp.float32)

    # deterministic synthetic parameters (shapes from GEParams(in_dim=4, extent=2))
    conv_w = 0.3 * jax.random.normal(k_w, (C, 1, 3, 3), jnp.float32)   # depthwise weight
    gamma = 1.0 + 0.1 * jax.random.normal(k_g, (C,), jnp.float32)      # BN weight
    beta = 0.1 * jax.random.normal(k_b, (C,), jnp.float32)             # BN bias
    run_mean = 0.05 * jax.random.normal(k_m, (C,), jnp.float32)        # BN running mean
    run_var = 0.5 + 0.5 * jnp.abs(jax.random.normal(k_v, (C,), jnp.float32))  # BN running var

    out = ge_params_forward(x, conv_w, gamma, beta, run_mean, run_var)
    out = jax.block_until_ready(out)

    ref = ge_params_reference(x, conv_w, gamma, beta, run_mean, run_var)
    assert out.shape == x.shape and out.dtype == x.dtype
    # Tolerance accounts for the approximate EUP reciprocal used in the in-kernel
    # sigmoid; structural/phase/tap bugs would produce O(0.1+) errors.
    err = float(jnp.max(jnp.abs(out - ref)))
    assert jnp.allclose(out, ref, rtol=1e-2, atol=1e-2), err

    print("KERNEL_OK")
</pallas_src>

<mosaic_0001>
module attributes {stable_mosaic.version = 11 : i64} {
  func.func @_ge_kernel(%arg0: i32, %arg1: memref<1x4x8x32xf32, #tpu.memory_space<vmem>>, %arg2: memref<10x32xf32, #tpu.memory_space<vmem>>, %arg3: memref<1x4x8x32xf32, #tpu.memory_space<vmem>>, %arg4: memref<8x32xf32, #tpu.memory_space<vmem>>) attributes {dimension_semantics = [#tpu.dimension_semantics<parallel>], iteration_bounds = array<i64: 2>, scalar_prefetch = 0 : i64, scratch_operands = 1 : i64, tpu.core_type = #tpu.core_type<tc>, window_params = [{transform_indices = @transform_0, window_bounds = array<i64: 1, 4, 8, 32>}, {pipeline_mode = #tpu.pipeline_mode<synchronous>, transform_indices = @transform_1, window_bounds = array<i64: 10, 32>}, {transform_indices = @transform_2, window_bounds = array<i64: 1, 4, 8, 32>}]} {
    %c0 = arith.constant 0 : index
    %c0_0 = arith.constant 0 : index
    %c0_1 = arith.constant 0 : index
    %c0_2 = arith.constant 0 : index
    %0 = vector.load %arg1[%c0, %c0_0, %c0_1, %c0_2] : memref<1x4x8x32xf32, #tpu.memory_space<vmem>>, vector<1x1x8x32xf32>
    %1 = vector.shape_cast %0 : vector<1x1x8x32xf32> to vector<8x32xf32>
    %c0_3 = arith.constant 0 : index
    %c1 = arith.constant 1 : index
    %c0_4 = arith.constant 0 : index
    %c0_5 = arith.constant 0 : index
    %2 = vector.load %arg1[%c0_3, %c1, %c0_4, %c0_5] : memref<1x4x8x32xf32, #tpu.memory_space<vmem>>, vector<1x1x8x32xf32>
    %3 = vector.shape_cast %2 : vector<1x1x8x32xf32> to vector<8x32xf32>
    %c0_6 = arith.constant 0 : index
    %c2 = arith.constant 2 : index
    %c0_7 = arith.constant 0 : index
    %c0_8 = arith.constant 0 : index
    %4 = vector.load %arg1[%c0_6, %c2, %c0_7, %c0_8] : memref<1x4x8x32xf32, #tpu.memory_space<vmem>>, vector<1x1x8x32xf32>
    %5 = vector.shape_cast %4 : vector<1x1x8x32xf32> to vector<8x32xf32>
    %c0_9 = arith.constant 0 : index
    %c3 = arith.constant 3 : index
    %c0_10 = arith.constant 0 : index
    %c0_11 = arith.constant 0 : index
    %6 = vector.load %arg1[%c0_9, %c3, %c0_10, %c0_11] : memref<1x4x8x32xf32, #tpu.memory_space<vmem>>, vector<1x1x8x32xf32>
    %7 = vector.shape_cast %6 : vector<1x1x8x32xf32> to vector<8x32xf32>
    %c9 = arith.constant 9 : index
    %c0_12 = arith.constant 0 : index
    %8 = vector.load %arg2[%c9, %c0_12] : memref<10x32xf32, #tpu.memory_space<vmem>>, vector<1x32xf32>
    %c4 = arith.constant 4 : index
    %c0_13 = arith.constant 0 : index
    %9 = vector.load %arg2[%c4, %c0_13] : memref<10x32xf32, #tpu.memory_space<vmem>>, vector<1x32xf32>
    %10 = vector.broadcast %9 : vector<1x32xf32> to vector<8x32xf32>
    %11 = arith.mulf %1, %10 : vector<8x32xf32>
    %c5 = arith.constant 5 : index
    %c0_14 = arith.constant 0 : index
    %12 = vector.load %arg2[%c5, %c0_14] : memref<10x32xf32, #tpu.memory_space<vmem>>, vector<1x32xf32>
    %13 = vector.broadcast %12 : vector<1x32xf32> to vector<8x32xf32>
    %14 = arith.mulf %3, %13 : vector<8x32xf32>
    %15 = arith.addf %11, %14 : vector<8x32xf32>
    %c7 = arith.constant 7 : index
    %c0_15 = arith.constant 0 : index
    %16 = vector.load %arg2[%c7, %c0_15] : memref<10x32xf32, #tpu.memory_space<vmem>>, vector<1x32xf32>
    %17 = vector.broadcast %16 : vector<1x32xf32> to vector<8x32xf32>
    %18 = arith.mulf %5, %17 : vector<8x32xf32>
    %19 = arith.addf %15, %18 : vector<8x32xf32>
    %c8 = arith.constant 8 : index
    %c0_16 = arith.constant 0 : index
    %20 = vector.load %arg2[%c8, %c0_16] : memref<10x32xf32, #tpu.memory_space<vmem>>, vector<1x32xf32>
    %21 = vector.broadcast %20 : vector<1x32xf32> to vector<8x32xf32>
    %22 = arith.mulf %7, %21 : vector<8x32xf32>
    %23 = arith.addf %19, %22 : vector<8x32xf32>
    %24 = vector.broadcast %8 : vector<1x32xf32> to vector<8x32xf32>
    %25 = arith.addf %23, %24 : vector<8x32xf32>
    %c0_17 = arith.constant 0 : index
    %c0_18 = arith.constant 0 : index
    %26 = vector.load %arg4[%c0_17, %c0_18] : memref<8x32xf32, #tpu.memory_space<vmem>>, vector<8x32xf32>
    tpu.vector_store %arg4[%c0_17, %c0_18], %25 {strides = array<i32>} : memref<8x32xf32, #tpu.memory_space<vmem>>, vector<8x32xf32>,
    %c1_19 = arith.constant 1 : index
    %c0_20 = arith.constant 0 : index
    %27 = vector.load %arg4[%c1_19, %c0_20] : memref<8x32xf32, #tpu.memory_space<vmem>>, vector<7x32xf32>
    %28 = vector.extract_strided_slice %5 {offsets = [0, 0], sizes = [7, 32], strides = [1, 1]} : vector<8x32xf32> to vector<7x32xf32>
    %c1_21 = arith.constant 1 : index
    %c0_22 = arith.constant 0 : index
    %29 = vector.load %arg2[%c1_21, %c0_22] : memref<10x32xf32, #tpu.memory_space<vmem>>, vector<1x32xf32>
    %30 = vector.broadcast %29 : vector<1x32xf32> to vector<7x32xf32>
    %31 = arith.mulf %28, %30 : vector<7x32xf32>
    %32 = vector.extract_strided_slice %7 {offsets = [0, 0], sizes = [7, 32], strides = [1, 1]} : vector<8x32xf32> to vector<7x32xf32>
    %c2_23 = arith.constant 2 : index
    %c0_24 = arith.constant 0 : index
    %33 = vector.load %arg2[%c2_23, %c0_24] : memref<10x32xf32, #tpu.memory_space<vmem>>, vector<1x32xf32>
    %34 = vector.broadcast %33 : vector<1x32xf32> to vector<7x32xf32>
    %35 = arith.mulf %32, %34 : vector<7x32xf32>
    %36 = arith.addf %31, %35 : vector<7x32xf32>
    %37 = arith.addf %27, %36 : vector<7x32xf32>
    %c1_25 = arith.constant 1 : index
    %c0_26 = arith.constant 0 : index
    %38 = vector.load %arg4[%c1_25, %c0_26] : memref<8x32xf32, #tpu.memory_space<vmem>>, vector<7x32xf32>
    tpu.vector_store %arg4[%c1_25, %c0_26], %37 {strides = array<i32>} : memref<8x32xf32, #tpu.memory_space<vmem>>, vector<7x32xf32>,
    %c0_27 = arith.constant 0 : index
    %c4_28 = arith.constant 4 : index
    %39 = vector.load %arg4[%c0_27, %c4_28] : memref<8x32xf32, #tpu.memory_space<vmem>>, vector<8x28xf32>
    %40 = vector.extract_strided_slice %3 {offsets = [0, 0], sizes = [8, 28], strides = [1, 1]} : vector<8x32xf32> to vector<8x28xf32>
    %c3_29 = arith.constant 3 : index
    %c0_30 = arith.constant 0 : index
    %41 = vector.load %arg2[%c3_29, %c0_30] : memref<10x32xf32, #tpu.memory_space<vmem>>, vector<1x32xf32>
    %42 = vector.extract_strided_slice %41 {offsets = [0, 0], sizes = [1, 28], strides = [1, 1]} : vector<1x32xf32> to vector<1x28xf32>
    %43 = vector.broadcast %42 : vector<1x28xf32> to vector<8x28xf32>
    %44 = arith.mulf %40, %43 : vector<8x28xf32>
    %45 = vector.extract_strided_slice %7 {offsets = [0, 0], sizes = [8, 28], strides = [1, 1]} : vector<8x32xf32> to vector<8x28xf32>
    %c6 = arith.constant 6 : index
    %c0_31 = arith.constant 0 : index
    %46 = vector.load %arg2[%c6, %c0_31] : memref<10x32xf32, #tpu.memory_space<vmem>>, vector<1x32xf32>
    %47 = vector.extract_strided_slice %46 {offsets = [0, 0], sizes = [1, 28], strides = [1, 1]} : vector<1x32xf32> to vector<1x28xf32>
    %48 = vector.broadcast %47 : vector<1x28xf32> to vector<8x28xf32>
    %49 = arith.mulf %45, %48 : vector<8x28xf32>
    %50 = arith.addf %44, %49 : vector<8x28xf32>
    %51 = arith.addf %39, %50 : vector<8x28xf32>
    %c0_32 = arith.constant 0 : index
    %c4_33 = arith.constant 4 : index
    %52 = vector.load %arg4[%c0_32, %c4_33] : memref<8x32xf32, #tpu.memory_space<vmem>>, vector<8x28xf32>
    tpu.vector_store %arg4[%c0_32, %c4_33], %51 {strides = array<i32>} : memref<8x32xf32, #tpu.memory_space<vmem>>, vector<8x28xf32>,
    %c1_34 = arith.constant 1 : index
    %c4_35 = arith.constant 4 : index
    %53 = vector.load %arg4[%c1_34, %c4_35] : memref<8x32xf32, #tpu.memory_space<vmem>>, vector<7x28xf32>
    %54 = vector.extract_strided_slice %7 {offsets = [0, 0], sizes = [7, 28], strides = [1, 1]} : vector<8x32xf32> to vector<7x28xf32>
    %c0_36 = arith.constant 0 : index
    %c0_37 = arith.constant 0 : index
    %55 = vector.load %arg2[%c0_36, %c0_37] : memref<10x32xf32, #tpu.memory_space<vmem>>, vector<1x32xf32>
    %56 = vector.extract_strided_slice %55 {offsets = [0, 0], sizes = [1, 28], strides = [1, 1]} : vector<1x32xf32> to vector<1x28xf32>
    %57 = vector.broadcast %56 : vector<1x28xf32> to vector<7x28xf32>
    %58 = arith.mulf %54, %57 : vector<7x28xf32>
    %59 = arith.addf %53, %58 : vector<7x28xf32>
    %c1_38 = arith.constant 1 : index
    %c4_39 = arith.constant 4 : index
    %60 = vector.load %arg4[%c1_38, %c4_39] : memref<8x32xf32, #tpu.memory_space<vmem>>, vector<7x28xf32>
    tpu.vector_store %arg4[%c1_38, %c4_39], %59 {strides = array<i32>} : memref<8x32xf32, #tpu.memory_space<vmem>>, vector<7x28xf32>,
    %c0_40 = arith.constant 0 : index
    %c0_41 = arith.constant 0 : index
    %61 = vector.load %arg4[%c0_40, %c0_41] : memref<8x32xf32, #tpu.memory_space<vmem>>, vector<8x32xf32>
    %62 = math.absf %61 : vector<8x32xf32>
    %cst = arith.constant 0.000000e+00 : f32
    %63 = vector.broadcast %cst : f32 to vector<8x32xf32>
    %64 = arith.subf %63, %62 : vector<8x32xf32>
    %65 = math.exp %64 : vector<8x32xf32>
    %cst_42 = arith.constant 0.000000e+00 : f32
    %66 = vector.broadcast %cst_42 : f32 to vector<8x32xf32>
    %67 = arith.cmpf oge, %61, %66 : vector<8x32xf32>
    %cst_43 = arith.constant 1.000000e+00 : f32
    %68 = vector.broadcast %cst_43 : f32 to vector<8x32xf32>
    %69 = arith.select %67, %68, %65 : vector<8x32xi1>, vector<8x32xf32>
    %cst_44 = arith.constant 1.000000e+00 : f32
    %70 = vector.broadcast %cst_44 : f32 to vector<8x32xf32>
    %71 = arith.addf %70, %65 : vector<8x32xf32>
    %72 = tpu.reciprocal %71 {approx = true} : vector<8x32xf32> -> vector<8x32xf32>
    %73 = arith.mulf %69, %72 : vector<8x32xf32>
    %74 = arith.mulf %73, %1 : vector<8x32xf32>
    %c0_45 = arith.constant 0 : index
    %c0_46 = arith.constant 0 : index
    %c0_47 = arith.constant 0 : index
    %c0_48 = arith.constant 0 : index
    %75 = vector.load %arg3[%c0_45, %c0_46, %c0_47, %c0_48] : memref<1x4x8x32xf32, #tpu.memory_space<vmem>>, vector<1x1x8x32xf32>
    %76 = vector.shape_cast %75 : vector<1x1x8x32xf32> to vector<8x32xf32>
    %77 = vector.shape_cast %74 : vector<8x32xf32> to vector<1x1x8x32xf32>
    tpu.vector_store %arg3[%c0_45, %c0_46, %c0_47, %c0_48], %77 {strides = array<i32>} : memref<1x4x8x32xf32, #tpu.memory_space<vmem>>, vector<1x1x8x32xf32>,
    %78 = arith.mulf %73, %3 : vector<8x32xf32>
    %c0_49 = arith.constant 0 : index
    %c1_50 = arith.constant 1 : index
    %c0_51 = arith.constant 0 : index
    %c0_52 = arith.constant 0 : index
    %79 = vector.load %arg3[%c0_49, %c1_50, %c0_51, %c0_52] : memref<1x4x8x32xf32, #tpu.memory_space<vmem>>, vector<1x1x8x32xf32>
    %80 = vector.shape_cast %79 : vector<1x1x8x32xf32> to vector<8x32xf32>
    %81 = vector.shape_cast %78 : vector<8x32xf32> to vector<1x1x8x32xf32>
    tpu.vector_store %arg3[%c0_49, %c1_50, %c0_51, %c0_52], %81 {strides = array<i32>} : memref<1x4x8x32xf32, #tpu.memory_space<vmem>>, vector<1x1x8x32xf32>,
    %82 = arith.mulf %73, %5 : vector<8x32xf32>
    %c0_53 = arith.constant 0 : index
    %c2_54 = arith.constant 2 : index
    %c0_55 = arith.constant 0 : index
    %c0_56 = arith.constant 0 : index
    %83 = vector.load %arg3[%c0_53, %c2_54, %c0_55, %c0_56] : memref<1x4x8x32xf32, #tpu.memory_space<vmem>>, vector<1x1x8x32xf32>
    %84 = vector.shape_cast %83 : vector<1x1x8x32xf32> to vector<8x32xf32>
    %85 = vector.shape_cast %82 : vector<8x32xf32> to vector<1x1x8x32xf32>
    tpu.vector_store %arg3[%c0_53, %c2_54, %c0_55, %c0_56], %85 {strides = array<i32>} : memref<1x4x8x32xf32, #tpu.memory_space<vmem>>, vector<1x1x8x32xf32>,
    %86 = arith.mulf %73, %7 : vector<8x32xf32>
    %c0_57 = arith.constant 0 : index
    %c3_58 = arith.constant 3 : index
    %c0_59 = arith.constant 0 : index
    %c0_60 = arith.constant 0 : index
    %87 = vector.load %arg3[%c0_57, %c3_58, %c0_59, %c0_60] : memref<1x4x8x32xf32, #tpu.memory_space<vmem>>, vector<1x1x8x32xf32>
    %88 = vector.shape_cast %87 : vector<1x1x8x32xf32> to vector<8x32xf32>
    %89 = vector.shape_cast %86 : vector<8x32xf32> to vector<1x1x8x32xf32>
    tpu.vector_store %arg3[%c0_57, %c3_58, %c0_59, %c0_60], %89 {strides = array<i32>} : memref<1x4x8x32xf32, #tpu.memory_space<vmem>>, vector<1x1x8x32xf32>,
    return
  }
  func.func @transform_0(%arg0: i32) -> (i32, i32, i32, i32) {
    %c0_i32 = arith.constant 0 : i32
    %c0_i32_0 = arith.constant 0 : i32
    %c0_i32_1 = arith.constant 0 : i32
    %c0_i32_2 = arith.constant 0 : i32
    return %arg0, %c0_i32, %c0_i32_0, %c0_i32_1 : i32, i32, i32, i32
  }
  func.func @transform_1(%arg0: i32) -> (i32, i32) {
    %c0_i32 = arith.constant 0 : i32
    %c0_i32_0 = arith.constant 0 : i32
    %c0_i32_1 = arith.constant 0 : i32
    return %c0_i32, %c0_i32_0 : i32, i32
  }
  func.func @transform_2(%arg0: i32) -> (i32, i32, i32, i32) {
    %c0_i32 = arith.constant 0 : i32
    %c0_i32_0 = arith.constant 0 : i32
    %c0_i32_1 = arith.constant 0 : i32
    %c0_i32_2 = arith.constant 0 : i32
    return %arg0, %c0_i32, %c0_i32_0, %c0_i32_1 : i32, i32, i32, i32
  }
}

</mosaic_0001>

<bundles_post_ra>
// kernel: ge_params_forward.1
= control target key start
LH: loop header
LB: loop body
LE: loop exit
PB: predicated region body
PF: predicated region fallthrough
CT: control target
= control target key end

     0   :  { %s380_s9 = smov 0   ;;  %s439_s0 = inlined_call_operand.vmem [shape: f32[2,4,8,32], index: 0, kind: input, shape index: {}, may-alias: {0,2}]   ;;  %s440_s1 = inlined_call_operand.vmem [shape: f32[10,32], index: 1, kind: input, shape index: {}]   ;;  %s441_s2 = inlined_call_operand.vmem [shape: f32[2,4,8,32], index: 2, kind: output, shape index: {}, may-alias: {0,2}]  }
   0x1 LB: > { %s314_s10 = sadd.s32 4294967295, %s362_s9   ;;  %p318_p0 = scmp.ge.s32.totalorder %s362_s9, 1  ;;  %s362_s9 = sphi %s380_s9, %s12_s9  }
   0x2   : > { %p112_p1 = scmp.lt.s32.totalorder %s362_s9, 3 }
   0x4   : > { %p113_p2 = pnand %p318_p0, %p112_p1 }
   0x5   : > { %p134_p3 = scmp.lt.s32.totalorder (!%p113_p2), %s314_s10, 1  ;;  %v327_v0 = vld [vmem:[%s440_s1 + $0x5] ss:$0 sm:$0xff] (!%p113_p2)  ;;  %v333_v1 = vld [vmem:[%s440_s1 + $0x3] ss:$0 sm:$0xff] (!%p113_p2)  ;;  %s364_s29 = smov (!%p113_p2), 4  }
   0x6   : > { %116 = sbr.rel (%p113_p2) target bundleno = 192 (0xc0), region = 28  ;;  %v334_v2 = vld [vmem:[%s440_s1 + $0x6] ss:$0 sm:$0xff] (!%p113_p2)  ;;  %v326_v3 = vld [vmem:[%s440_s1 + $0x4] ss:$0 sm:$0xff] (!%p113_p2)  ;;  %vm184_vm0 = vcmask (!%p113_p2), 261120  }
   0x7   : > { %v328_v4 = vld [vmem:[%s440_s1 + $0x7] ss:$0 sm:$0xff] (!%p113_p2)  ;;  %v335_v12 = vld [vmem:[%s440_s1] ss:$0 sm:$0xff] (!%p113_p2)  ;;  %v329_v13 = vld [vmem:[%s440_s1 + $0x8] ss:$0 sm:$0xff] (!%p113_p2) }
   0x8   : > { %v330_v21 = vld [vmem:[%s440_s1 + $0x9] ss:$0 sm:$0xff] (!%p113_p2)  ;;  %v331_v23 = vld [vmem:[%s440_s1 + $0x1] ss:$0 sm:$0xff] (!%p113_p2)  ;;  %v332_v24 = vld [vmem:[%s440_s1 + $0x2] ss:$0 sm:$0xff] (!%p113_p2) }
   0x9   : > { %vm201_vm1 = vcmask (!%p113_p2), 260096   ;;  %vm222_vm2 = vcmask (!%p113_p2), 261152   ;;  %vm236_vm3 = vcmask (!%p113_p2), 260128  }
   0xd   : > { %s443_s10 = smov (!%p134_p3, %s314_s10), 1 }
   0xe   : > { %s341_s13 = sshll.u32 %s443_s10, 5 }
   0xf   : > { %s138_s20 = scalar_lea.vmem %s439_s0, %s341_s13  ;;  %s143_s12 = scalar_lea.vmem %s441_s2, %s341_s13 }
  0x10   : > { %v323_v5 = vld [vmem:[%s138_s20 + $0x8] sm:$0xff]  ;;  %v324_v6 = vld [vmem:[%s138_s20 + $0x10] sm:$0xff]  ;;  %v325_v7 = vld [vmem:[%s138_s20 + $0x18] sm:$0xff] }
  0x11   : > { %v209_v8 = vmul.f32 %v333_v1, %v323_v5  ;;  %v215_v9 = vmul.f32 %v334_v2, %v325_v7  ;;  %v144_v10 = vld [vmem:[%s138_s20] sm:$0xff]  ;;  %v163_v11 = vmul.f32 %v327_v0, %v323_v5  ;;  %v170_v15 = vmul.f32 %v328_v4, %v324_v6 }
  0x12   : > { %v157_v16 = vmul.f32 %v326_v3, %v144_v10  ;;  %v230_v17 = vmul.f32 %v335_v12, %v325_v7  ;;  %v177_v18 = vmul.f32 %v329_v13, %v325_v7  ;;  %v192_v26 = vmul.f32 %v331_v23, %v324_v6 }
  0x13   : > { %v216_v14 = vadd.f32 %v215_v9, %v209_v8  ;;  %v198_v27 = vmul.f32 %v332_v24, %v325_v7 }
  0x14   : > { %v164_v19 = vadd.f32 %v163_v11, %v157_v16 }
  0x15   : > { %218 = vrot.lane.b32.xlu0 %v216_v14, %s364_s29  ;;  %v199_v28 = vadd.f32 %v198_v27, %v192_v26 }
  0x16   : > { %v171_v20 = vadd.f32 %v170_v15, %v164_v19 }
  0x18   : > { %v178_v22 = vadd.f32 %v177_v18, %v171_v20 }
  0x19   : > { %232 = vrot.lane.b32.xlu0 %v230_v17, %s364_s29 }
  0x1a   : > { %v183_v25 = vadd.f32 %v330_v21, %v178_v22 }
  0x1c   : > { %185 = vst.msk [vmem:[#allocation2] sm:$0xff] %vm184_vm0, %v183_v25 }
  0x23   : > { %v186_v29 = vld [vmem:[#allocation2 + $0x1] sm:$0x7f] }
  0x24   : > { %v200_v30 = vadd.f32 %v199_v28, %v186_v29 }
  0x26   : > { %202 = vst.msk [vmem:[#allocation2 + $0x1] sm:$0x7f] %vm201_vm1, %v200_v30 }
  0x2d   : > { %v203_v31 = vld [vmem:[#allocation2] sm:$0xff] }
  0x87   : > { %v219_v32 = vpop.permute.xlu0 %218 }
  0x88   : > { %v221_v33 = vadd.f32 %v219_v32, %v203_v31 }
  0x8a   : > { %223 = vst.msk [vmem:[#allocation2] sm:$0xff] %vm222_vm2, %v221_v33 }
  0x8b   : > { %v233_v34 = vpop.permute.xlu0 %232 }
  0x91   : > { %v224_v35 = vld [vmem:[#allocation2 + $0x1] sm:$0x7f] }
  0x92   : > { %v235_v36 = vadd.f32 %v233_v34, %v224_v35 }
  0x94   : > { %237 = vst.msk [vmem:[#allocation2 + $0x1] sm:$0x7f] %vm236_vm3, %v235_v36 }
  0x9b   : > { %v238_v37 = vld [vmem:[#allocation2] sm:$0xff] }
  0x9c   : > { %v239_v38 = vand.u32 2147483647, %v238_v37  ;;  %vm243_vm4 = vcmp.ge.f32.partialorder %v238_v37, 0.0 }
  0x9e   : > { %v240_v39 = vsub.f32 0.0, %v239_v38 }
  0xa0   : > { %v241_v40 = vmul.f32 1.442695, %v240_v39 }
  0xa2   : > { %352 = vpow2.f32 %v241_v40 }
  0xac   : > { %v353_v41 = vpop.eup %352 }
  0xad   : > { %v245_v42 = vadd.f32 1.0, %v353_v41  ;;  %v244_v44 = vsel %vm243_vm4, 1.0, %v353_v41 }
  0xaf   : > { %354 = vrcp.f32 %v245_v42 }
  0xb9   : > { %v355_v43 = vpop.eup %354 }
  0xba   : > { %v247_v45 = vmul.f32 %v355_v43, %v244_v44 }
  0xbc   : > { %v248_v46 = vmul.f32 %v247_v45, %v144_v10  ;;  %v250_v47 = vmul.f32 %v323_v5, %v247_v45  ;;  %v253_v48 = vmul.f32 %v324_v6, %v247_v45  ;;  %v256_v49 = vmul.f32 %v325_v7, %v247_v45 }
  0xbe   : > { %249 = vst.msk [vmem:[%s143_s12] sm:$0xff] %vm184_vm0, %v248_v46  ;;  %336 = vst.msk [vmem:[%s143_s12 + $0x8] sm:$0xff] %vm184_vm0, %v250_v47 }
  0xbf   : > { %337 = vst.msk [vmem:[%s143_s12 + $0x10] sm:$0xff] %vm184_vm0, %v253_v48  ;;  %338 = vst.msk [vmem:[%s143_s12 + $0x18] sm:$0xff] %vm184_vm0, %v256_v49 }
  0xc0 PF: > { %s12_s9 = sadd.s32 1, %s362_s9  }
  0xc1   : > { %p9_p4 = scmp.ge.s32.totalorder %s12_s9, 4  }
  0xc3   :  { %11 = sbr.rel (!%p9_p4) target bundleno = 1 (0x1), region = 64 }

</bundles_post_ra>
